<compile_context>
chip_gen: v7x
topology: tpu7x:2x2x1
jax: 0.10.0
libtpu: 0.0.40
codegen_flags: <defaults>
</compile_context>

<pallas_src>
import functools

import jax
import jax.numpy as jnp
from jax.experimental import pallas as pl
from jax.experimental.pallas import tpu as pltpu

_LANES = 128


def _round_up(v, m):
    return (v + m - 1) // m * m


def densenet_kernel(x_ref, wx_ref, bx_ref, wf_ref, wh2o_ref, o_ref, rhs_ref, *, hid_p):
    """One batch tile (T = tile, batch along the 128-lane axis).

       x_ref:   (2, T)              streamed x^T tile (f32 or bf16)
       wx_ref:  (hid_p, 2)   f32    in_to_hid1 weights (zero-padded rows)
       bx_ref:  (hid_p, 1)   f32    in_to_hid1 bias
       wf_ref:  (hid_p+1, hid_p+3)  fused [hid1_to_hid2|in_to_hid2|bias ; hid1_to_out|in_to_out|bias]
       wh2o_ref:(1, hid_p)          hid2_to_out weights
       o_ref:   (1, T)       f32    sigmoid output
       rhs_ref: (hid_p+3, T)        VMEM scratch holding the fused-dot RHS [hid1; x0; x1; 1]
    """
    act_dtype = rhs_ref.dtype
    xf = x_ref[...].astype(jnp.float32)                        # upcast if streamed as bf16
    x0 = xf[0:1, :]                                            # (1, T)
    x1 = xf[1:2, :]                                            # (1, T)

    # in_to_hid1: the only remaining fan_in=2 projection on the VPU (K=2 MXU dot
    # would waste >98% of the array and hid1 feeds the fused dot anyway).
    wx = wx_ref[...]
    pre1 = wx[:, 0:1] * x0 + wx[:, 1:2] * x1 + bx_ref[...]     # (hid_p, T) VPU FMAs
    hid1 = jnp.tanh(pre1.astype(act_dtype))                    # (hid_p, T)

    # Build the fused-dot RHS [hid1 ; x0 ; x1 ; 1] in VMEM scratch (no concatenate).
    # All rows are (re)written every grid step, so this is safe under megacore
    # "parallel" sharding (no cross-iteration scratch dependence).
    rhs_ref[pl.ds(0, hid_p), :] = hid1
    rhs_ref[pl.ds(hid_p, 1), :] = x0.astype(act_dtype)
    rhs_ref[pl.ds(hid_p + 1, 1), :] = x1.astype(act_dtype)
    rhs_ref[pl.ds(hid_p + 2, 1), :] = jnp.ones_like(x0, dtype=act_dtype)

    # One MXU dot computes hid2_sum (rows [0:hid_p]) AND the hid1/x/bias part of
    # out_sum (row [hid_p]): biases ride along via the ones row.
    h1p = jnp.dot(wf_ref[...], rhs_ref[...],
                  preferred_element_type=jnp.float32)          # (hid_p+1, T)

    hid2 = jnp.tanh(h1p[:hid_p, :].astype(act_dtype))          # (hid_p, T)

    out_pre = h1p[hid_p:, :] + jnp.dot(wh2o_ref[...], hid2,
                                       preferred_element_type=jnp.float32)  # (1, T)

    # sigmoid(z) == 0.5 * (tanh(z / 2) + 1): keeps the transcendental on the EUP slot.
    o_ref[...] = 0.5 * (jnp.tanh(0.5 * out_pre) + 1.0)


def _pack_params(params, *, act_dtype=jnp.float32):
    """Fuse the PyTorch-layout (out_features, in_features) weights for the kernel.

    hid is padded to hid_p (multiple of 8) so every in-kernel row split is
    (8,128)-tile aligned; padded rows/columns are zero so the math is unchanged.
    """
    hid = params["w_h12"].shape[0]
    hid_p = _round_up(hid, 8)
    f32 = jnp.float32

    # in_to_hid1 (stays on the VPU, f32).
    wx = jnp.zeros((hid_p, 2), f32).at[:hid, :].set(params["w_ih1"].astype(f32))
    bx = jnp.zeros((hid_p, 1), f32).at[:hid, 0].set(params["b_ih1"].astype(f32))

    # Fused MXU weight:
    #   rows [0:hid]   -> hid2_sum   = w_h12 @ hid1 + w_ih2 @ x + (b_ih2 + b_h12)
    #   row  [hid_p]   -> out (part) = w_h1o @ hid1 + w_io  @ x + (b_io + b_h1o + b_h2o)
    # RHS column layout: [hid1 (hid_p) ; x0 ; x1 ; 1].
    wf = jnp.zeros((hid_p + 1, hid_p + 3), f32)
    wf = wf.at[:hid, :hid].set(params["w_h12"].astype(f32))
    wf = wf.at[:hid, hid_p:hid_p + 2].set(params["w_ih2"].astype(f32))
    wf = wf.at[:hid, hid_p + 2].set((params["b_ih2"] + params["b_h12"]).astype(f32))
    wf = wf.at[hid_p, :hid].set(params["w_h1o"][0].astype(f32))
    wf = wf.at[hid_p, hid_p:hid_p + 2].set(params["w_io"][0].astype(f32))
    wf = wf.at[hid_p, hid_p + 2].set(
        (params["b_io"] + params["b_h1o"] + params["b_h2o"])[0].astype(f32))

    wh2o = jnp.zeros((1, hid_p), f32).at[0, :hid].set(params["w_h2o"][0].astype(f32))

    return hid_p, wx, bx, wf.astype(act_dtype), wh2o.astype(act_dtype)


def densenet_forward(x, params, *, tile_n=16384, x_dtype=None, act_dtype=jnp.float32):
    """x: (N, 2) float32. params: PyTorch-layout weights/biases. Returns (N, 1) float32.

    tile_n:    batch tile along the lane axis (16384 default; 32768 fine on v6e/v7x).
    x_dtype:   optional streaming dtype for x (jnp.bfloat16 halves HBM read traffic).
    act_dtype: dtype of activations / MXU operands (jnp.bfloat16 on v6e/v7x; keep
               f32 on v5e, which has no bf16 VPU/EUP).  Accumulation is always f32.
    """
    N = x.shape[0]
    hid_p, wx, bx, wf, wh2o = _pack_params(params, act_dtype=act_dtype)

    # Batch along lanes: stream x^T (2, N).  Run this wrapper under jax.jit so the
    # transpose / cast / pad fuse into a single HBM pass outside the kernel.
    xt = x.T
    if x_dtype is not None:
        xt = xt.astype(x_dtype)

    tile = _round_up(min(tile_n, _round_up(N, _LANES)), _LANES)
    n_pad = _round_up(N, tile)
    if n_pad != N:
        xt = jnp.pad(xt, ((0, 0), (0, n_pad - N)))

    grid = (n_pad // tile,)
    const = lambda i: (0, 0)  # weights: fetched once, stay VMEM-resident across the grid

    out_t = pl.pallas_call(
        functools.partial(densenet_kernel, hid_p=hid_p),
        out_shape=jax.ShapeDtypeStruct((1, n_pad), jnp.float32),
        grid=grid,
        in_specs=[
            pl.BlockSpec((2, tile), lambda i: (0, i)),   # streamed x^T tile (double-buffered)
            pl.BlockSpec(wx.shape, const),
            pl.BlockSpec(bx.shape, const),
            pl.BlockSpec(wf.shape, const),
            pl.BlockSpec(wh2o.shape, const),
        ],
        out_specs=pl.BlockSpec((1, tile), lambda i: (0, i)),
        scratch_shapes=[pltpu.VMEM((hid_p + 3, tile), act_dtype)],   # fused-dot RHS
        compiler_params=pltpu.CompilerParams(
            dimension_semantics=("parallel",),           # v7x: two TCs split the batch grid
            vmem_limit_bytes=32 * 1024 * 1024,           # covers tile 16384 f32 on v5e too
        ),
    )(xt, wx, bx, wf, wh2o)

    return out_t[0, :N][:, None]


def init_params(key, hid):
    """torch.nn.Linear-style init, PyTorch layout: w (out_features, in_features), b (out_features,)."""
    def linear(k, fan_in, fan_out):
        kw, kb = jax.random.split(k)
        bound = 1.0 / (fan_in ** 0.5)
        w = jax.random.uniform(kw, (fan_out, fan_in), jnp.float32, -bound, bound)
        b = jax.random.uniform(kb, (fan_out,), jnp.float32, -bound, bound)
        return w, b

    keys = jax.random.split(key, 6)
    w_ih1, b_ih1 = linear(keys[0], 2, hid)
    w_ih2, b_ih2 = linear(keys[1], 2, hid)
    w_io, b_io = linear(keys[2], 2, 1)
    w_h12, b_h12 = linear(keys[3], hid, hid)
    w_h1o, b_h1o = linear(keys[4], hid, 1)
    w_h2o, b_h2o = linear(keys[5], hid, 1)
    return dict(w_ih1=w_ih1, b_ih1=b_ih1, w_ih2=w_ih2, b_ih2=b_ih2,
                w_io=w_io, b_io=b_io, w_h12=w_h12, b_h12=b_h12,
                w_h1o=w_h1o, b_h1o=b_h1o, w_h2o=w_h2o, b_h2o=b_h2o)


def densenet_ref(x, p):
    """Pure-JAX reference of the PyTorch forward (y = x @ W.T + b)."""
    hid1 = jnp.tanh(x @ p["w_ih1"].T + p["b_ih1"])
    hid2 = jnp.tanh(x @ p["w_ih2"].T + p["b_ih2"] + hid1 @ p["w_h12"].T + p["b_h12"])
    out_sum = (x @ p["w_io"].T + p["b_io"]
               + hid1 @ p["w_h1o"].T + p["b_h1o"]
               + hid2 @ p["w_h2o"].T + p["b_h2o"])
    return jax.nn.sigmoid(out_sum)


if __name__ == "__main__":
    key = jax.random.PRNGKey(0)
    k_x, k_p, k_x2 = jax.random.split(key, 3)

    N, HID = 8, 32
    x = jax.random.normal(k_x, (N, 2), dtype=jnp.float32)
    params = init_params(k_p, HID)

    # jit the wrapper so the x.T / cast / pad layout plumbing fuses into one HBM pass.
    fwd = jax.jit(densenet_forward, static_argnames=("tile_n", "x_dtype", "act_dtype"))

    out = jax.block_until_ready(fwd(x, params))
    ref = densenet_ref(x, params)
    assert out.shape == (N, 1)
    assert jnp.allclose(out, ref, atol=5e-5, rtol=5e-5)

    # Multi-tile grid path (grid of 3 tiles with a zero-padded ragged tail).
    N2 = 3000
    x2 = jax.random.normal(k_x2, (N2, 2), dtype=jnp.float32)
    out2 = jax.block_until_ready(fwd(x2, params, tile_n=1024))
    assert jnp.allclose(out2, densenet_ref(x2, params), atol=5e-5, rtol=5e-5)

    # bf16 activations + bf16 streamed input (v6e/v7x lever); accumulation stays f32.
    out_bf16 = jax.block_until_ready(
        fwd(x, params, x_dtype=jnp.bfloat16, act_dtype=jnp.bfloat16))
    assert jnp.allclose(out_bf16, ref, atol=5e-2)

    print("KERNEL_OK")
</pallas_src>

<mosaic_0001>
module attributes {stable_mosaic.version = 11 : i64} {
  func.func @densenet_kernel(%arg0: i32, %arg1: memref<2x128xf32, #tpu.memory_space<vmem>>, %arg2: memref<32x2xf32, #tpu.memory_space<vmem>>, %arg3: memref<32x1xf32, #tpu.memory_space<vmem>>, %arg4: memref<33x35xf32, #tpu.memory_space<vmem>>, %arg5: memref<1x32xf32, #tpu.memory_space<vmem>>, %arg6: memref<1x128xf32, #tpu.memory_space<vmem>>, %arg7: memref<35x128xf32, #tpu.memory_space<vmem>>) attributes {dimension_semantics = [#tpu.dimension_semantics<parallel>], iteration_bounds = array<i64: 1>, scalar_prefetch = 0 : i64, scratch_operands = 1 : i64, tpu.core_type = #tpu.core_type<tc>, window_params = [{transform_indices = @transform_0, window_bounds = array<i64: 2, 128>}, {pipeline_mode = #tpu.pipeline_mode<synchronous>, transform_indices = @transform_1, window_bounds = array<i64: 32, 2>}, {pipeline_mode = #tpu.pipeline_mode<synchronous>, transform_indices = @transform_2, window_bounds = array<i64: 32, 1>}, {pipeline_mode = #tpu.pipeline_mode<synchronous>, transform_indices = @transform_3, window_bounds = array<i64: 33, 35>}, {pipeline_mode = #tpu.pipeline_mode<synchronous>, transform_indices = @transform_4, window_bounds = array<i64: 1, 32>}, {transform_indices = @transform_5, window_bounds = array<i64: 1, 128>}]} {
    %c0 = arith.constant 0 : index
    %c0_0 = arith.constant 0 : index
    %0 = vector.load %arg1[%c0, %c0_0] : memref<2x128xf32, #tpu.memory_space<vmem>>, vector<2x128xf32>
    %1 = vector.extract_strided_slice %0 {offsets = [0, 0], sizes = [1, 128], strides = [1, 1]} : vector<2x128xf32> to vector<1x128xf32>
    %2 = vector.extract_strided_slice %0 {offsets = [1, 0], sizes = [1, 128], strides = [1, 1]} : vector<2x128xf32> to vector<1x128xf32>
    %c0_1 = arith.constant 0 : index
    %c0_2 = arith.constant 0 : index
    %3 = vector.load %arg2[%c0_1, %c0_2] : memref<32x2xf32, #tpu.memory_space<vmem>>, vector<32x2xf32>
    %4 = vector.extract_strided_slice %3 {offsets = [0, 0], sizes = [32, 1], strides = [1, 1]} : vector<32x2xf32> to vector<32x1xf32>
    %5 = vector.broadcast %4 : vector<32x1xf32> to vector<32x128xf32>
    %6 = vector.broadcast %1 : vector<1x128xf32> to vector<32x128xf32>
    %7 = arith.mulf %5, %6 : vector<32x128xf32>
    %8 = vector.extract_strided_slice %3 {offsets = [0, 1], sizes = [32, 1], strides = [1, 1]} : vector<32x2xf32> to vector<32x1xf32>
    %9 = vector.broadcast %8 : vector<32x1xf32> to vector<32x128xf32>
    %10 = vector.broadcast %2 : vector<1x128xf32> to vector<32x128xf32>
    %11 = arith.mulf %9, %10 : vector<32x128xf32>
    %12 = arith.addf %7, %11 : vector<32x128xf32>
    %c0_3 = arith.constant 0 : index
    %c0_4 = arith.constant 0 : index
    %13 = vector.load %arg3[%c0_3, %c0_4] : memref<32x1xf32, #tpu.memory_space<vmem>>, vector<32x1xf32>
    %14 = vector.broadcast %13 : vector<32x1xf32> to vector<32x128xf32>
    %15 = arith.addf %12, %14 : vector<32x128xf32>
    %16 = math.tanh %15 : vector<32x128xf32>
    %c0_5 = arith.constant 0 : index
    %c0_6 = arith.constant 0 : index
    %17 = vector.load %arg7[%c0_5, %c0_6] : memref<35x128xf32, #tpu.memory_space<vmem>>, vector<32x128xf32>
    tpu.vector_store %arg7[%c0_5, %c0_6], %16 {strides = array<i32>} : memref<35x128xf32, #tpu.memory_space<vmem>>, vector<32x128xf32>,
    %c32 = arith.constant 32 : index
    %c0_7 = arith.constant 0 : index
    %18 = vector.load %arg7[%c32, %c0_7] : memref<35x128xf32, #tpu.memory_space<vmem>>, vector<1x128xf32>
    tpu.vector_store %arg7[%c32, %c0_7], %1 {strides = array<i32>} : memref<35x128xf32, #tpu.memory_space<vmem>>, vector<1x128xf32>,
    %c33 = arith.constant 33 : index
    %c0_8 = arith.constant 0 : index
    %19 = vector.load %arg7[%c33, %c0_8] : memref<35x128xf32, #tpu.memory_space<vmem>>, vector<1x128xf32>
    tpu.vector_store %arg7[%c33, %c0_8], %2 {strides = array<i32>} : memref<35x128xf32, #tpu.memory_space<vmem>>, vector<1x128xf32>,
    %cst = arith.constant 1.000000e+00 : f32
    %20 = vector.broadcast %cst : f32 to vector<1x128xf32>
    %c34 = arith.constant 34 : index
    %c0_9 = arith.constant 0 : index
    %21 = vector.load %arg7[%c34, %c0_9] : memref<35x128xf32, #tpu.memory_space<vmem>>, vector<1x128xf32>
    tpu.vector_store %arg7[%c34, %c0_9], %20 {strides = array<i32>} : memref<35x128xf32, #tpu.memory_space<vmem>>, vector<1x128xf32>,
    %c0_10 = arith.constant 0 : index
    %c0_11 = arith.constant 0 : index
    %22 = vector.load %arg4[%c0_10, %c0_11] : memref<33x35xf32, #tpu.memory_space<vmem>>, vector<33x35xf32>
    %c0_12 = arith.constant 0 : index
    %c0_13 = arith.constant 0 : index
    %23 = vector.load %arg7[%c0_12, %c0_13] : memref<35x128xf32, #tpu.memory_space<vmem>>, vector<35x128xf32>
    %cst_14 = arith.constant dense<0.000000e+00> : vector<33x128xf32>
    %24 = tpu.matmul %22, %23, %cst_14 {dimension_numbers = #tpu.dot_dimension_numbers<[1], [0], [0], [1], [0, 0, 1, 1], [], []>} : vector<33x35xf32>, vector<35x128xf32>, vector<33x128xf32> -> vector<33x128xf32>
    %25 = vector.extract_strided_slice %24 {offsets = [0, 0], sizes = [32, 128], strides = [1, 1]} : vector<33x128xf32> to vector<32x128xf32>
    %26 = math.tanh %25 : vector<32x128xf32>
    %27 = vector.extract_strided_slice %24 {offsets = [32, 0], sizes = [1, 128], strides = [1, 1]} : vector<33x128xf32> to vector<1x128xf32>
    %c0_15 = arith.constant 0 : index
    %c0_16 = arith.constant 0 : index
    %28 = vector.load %arg5[%c0_15, %c0_16] : memref<1x32xf32, #tpu.memory_space<vmem>>, vector<1x32xf32>
    %cst_17 = arith.constant dense<0.000000e+00> : vector<1x128xf32>
    %29 = tpu.matmul %28, %26, %cst_17 {dimension_numbers = #tpu.dot_dimension_numbers<[1], [0], [0], [1], [0, 0, 1, 1], [], []>} : vector<1x32xf32>, vector<32x128xf32>, vector<1x128xf32> -> vector<1x128xf32>
    %30 = arith.addf %27, %29 : vector<1x128xf32>
    %cst_18 = arith.constant 5.000000e-01 : f32
    %31 = vector.broadcast %cst_18 : f32 to vector<1x128xf32>
    %32 = arith.mulf %31, %30 : vector<1x128xf32>
    %33 = math.tanh %32 : vector<1x128xf32>
    %cst_19 = arith.constant 1.000000e+00 : f32
    %34 = vector.broadcast %cst_19 : f32 to vector<1x128xf32>
    %35 = arith.addf %33, %34 : vector<1x128xf32>
    %cst_20 = arith.constant 5.000000e-01 : f32
    %36 = vector.broadcast %cst_20 : f32 to vector<1x128xf32>
    %37 = arith.mulf %36, %35 : vector<1x128xf32>
    %c0_21 = arith.constant 0 : index
    %c0_22 = arith.constant 0 : index
    %38 = vector.load %arg6[%c0_21, %c0_22] : memref<1x128xf32, #tpu.memory_space<vmem>>, vector<1x128xf32>
    tpu.vector_store %arg6[%c0_21, %c0_22], %37 {strides = array<i32>} : memref<1x128xf32, #tpu.memory_space<vmem>>, vector<1x128xf32>,
    return
  }
  func.func @transform_0(%arg0: i32) -> (i32, i32) {
    %c0_i32 = arith.constant 0 : i32
    %c0_i32_0 = arith.constant 0 : i32
    return %c0_i32, %arg0 : i32, i32
  }
  func.func @transform_1(%arg0: i32) -> (i32, i32) {
    %c0_i32 = arith.constant 0 : i32
    %c0_i32_0 = arith.constant 0 : i32
    %c0_i32_1 = arith.constant 0 : i32
    return %c0_i32, %c0_i32_0 : i32, i32
  }
  func.func @transform_2(%arg0: i32) -> (i32, i32) {
    %c0_i32 = arith.constant 0 : i32
    %c0_i32_0 = arith.constant 0 : i32
    %c0_i32_1 = arith.constant 0 : i32
    return %c0_i32, %c0_i32_0 : i32, i32
  }
  func.func @transform_3(%arg0: i32) -> (i32, i32) {
    %c0_i32 = arith.constant 0 : i32
    %c0_i32_0 = arith.constant 0 : i32
    %c0_i32_1 = arith.constant 0 : i32
    return %c0_i32, %c0_i32_0 : i32, i32
  }
  func.func @transform_4(%arg0: i32) -> (i32, i32) {
    %c0_i32 = arith.constant 0 : i32
    %c0_i32_0 = arith.constant 0 : i32
    %c0_i32_1 = arith.constant 0 : i32
    return %c0_i32, %c0_i32_0 : i32, i32
  }
  func.func @transform_5(%arg0: i32) -> (i32, i32) {
    %c0_i32 = arith.constant 0 : i32
    %c0_i32_0 = arith.constant 0 : i32
    return %c0_i32, %arg0 : i32, i32
  }
}

</mosaic_0001>

<bundles_post_ra>
// kernel: densenet_forward.1
= control target key start
LH: loop header
LB: loop body
LE: loop exit
PB: predicated region body
PF: predicated region fallthrough
CT: control target
= control target key end

     0   :  { %v436_v0 = vmov 1   ;;  %v437_v5 = vmov 0   ;;  %v438_v11 = vmov 0.0|0.0   ;;  %v439_v12 = vmov 1.0   ;;  %s545_s1 = inlined_call_operand.vmem [shape: f32[32,2], index: 1, kind: input, shape index: {}]   ;;  %s546_s0 = inlined_call_operand.vmem [shape: f32[2,128], index: 0, kind: input, shape index: {}]   ;;  %s547_s2 = inlined_call_operand.vmem [shape: f32[32,1], index: 2, kind: input, shape index: {}]   ;;  %s548_s3 = inlined_call_operand.vmem [shape: f32[33,35], index: 3, kind: input, shape index: {}]   ;;  %s549_s4 = inlined_call_operand.vmem [shape: f32[1,32], index: 4, kind: input, shape index: {}]   ;;  %s550_s5 = inlined_call_operand.vmem [shape: f32[1,128], index: 5, kind: output, shape index: {}]  }
   0x1   :  { %414 = vset.pattern.permute.xlu0 %v436_v0  ;;  %412 = vset.pattern.permute.xlu1 %v436_v0  ;;  %v23_v1 = vld [vmem:[%s545_s1 + $0x10] sm:$0xff]  ;;  %v21_v2 = vld [vmem:[%s545_s1] sm:$0xff]  ;;  %v22_v3 = vld [vmem:[%s545_s1 + $0x8] sm:$0xff]  ;;  %119 = vst [vmem:[#allocation2 + $0x22] sm:$0x1] %v439_v12  ;;  %vm440_vm0 = vmmov 0   ;;  %v45_v14 = vlaneseq }
   0x2   :  { %62 = vperm.xlu0 %414, %v23_v1   ;;  %54 = vperm.xlu1 %412, %v21_v2   ;;  %v20_v4 = vld [vmem:[%s546_s0] sm:$0x3]  ;;  %v24_v6 = vld [vmem:[%s545_s1 + $0x18] sm:$0xff]  ;;  %v82_v7 = vld [vmem:[%s547_s2 + $0x8] sm:$0xff]  ;;  %v441_v13 = vmov 0.0   ;;  %vm146_vm1 = vcmask 1042432  }
   0x3   :  { %117 = vst [vmem:[#allocation2 + $0x20] sm:$0x1] %v20_v4  ;;  %118 = vst [vmem:[#allocation2 + $0x20] sm:$0x2] %v20_v4  ;;  %v81_v8 = vld [vmem:[%s547_s2] sm:$0xff]  ;;  %v83_v9 = vld [vmem:[%s547_s2 + $0x10] sm:$0xff]  ;;  %387 = vmatprep.subr.bf16.mxu0 %v438_v11  ;;  %399 = vmatprep.subr.bf16.mxu1 %v438_v11 }
   0x4   :  { %v84_v10 = vld [vmem:[%s547_s2 + $0x18] sm:$0xff]  ;;  %361 = vmatprep.mubr.msk.f32.mxu0 %vm440_vm0, %v441_v13  ;;  %367 = vmatprep.mubr.msk.f32.mxu1 %vm440_vm0, %v441_v13  ;;  %v46_v17 = vshrl.u32 %v45_v14, 7  ;;  %v120_v55 = vld [vmem:[%s548_s3] sm:$0xff]  ;;  %vm130_vm2 = vcmask 285696   ;;  %v122_v56 = vld [vmem:[%s548_s3 + $0x10] sm:$0xff]  ;;  %vm245_vm3 = vcmask 261120  }
   0x5   :  { %v121_v57 = vld [vmem:[%s548_s3 + $0x8] sm:$0xff]  ;;  %v123_v58 = vld [vmem:[%s548_s3 + $0x18] sm:$0xff]  ;;  %v124_v59 = vld [vmem:[%s548_s3 + $0x20] sm:$0x1] }
   0x6   :  { %415 = vset.pattern.permute.xlu0 %v437_v5  ;;  %58 = vperm.xlu1 %412, %v22_v3   ;;  %v47_v20 = vsub.s32 0, %v46_v17  ;;  %v71_v21 = vsub.s32 1, %v46_v17 }
   0x7   :  { %27 = vperm.xlu0 %415, %v21_v2  }
   0x8   :  { %v48_v24 = vrot.slane %v20_v4, %v47_v20  ;;  %v72_v25 = vrot.slane %v20_v4, %v71_v21 }
   0xa   :  { %413 = vset.pattern.permute.xlu1 %v437_v5  ;;  %v129_v54 = vld [vmem:[#allocation2 + $0x20] sm:$0x7] }
   0xb   :  { %32 = vperm.xlu0 %415, %v22_v3   ;;  %42 = vperm.xlu1 %413, %v24_v6  }
   0xf   :  { %37 = vperm.xlu0 %415, %v23_v1   ;;  %416 = vset.pattern.permute.xlu1 %v436_v0 }
  0x10   :  { %66 = vperm.xlu1 %416, %v24_v6  }
  0x13   :  { %92 = vperm.xlu0 %415, %v82_v7  }
  0x14   :  { %417 = vset.pattern.permute.xlu1 %v437_v5 }
  0x15   :  { %87 = vperm.xlu1 %417, %v81_v8  }
  0x19   :  { %97 = vperm.xlu1 %417, %v83_v9  }
  0x1d   :  { %102 = vperm.xlu1 %417, %v84_v10   ;;  %v244_v10 = vld [vmem:[%s549_s4] sm:$0x1] }
  0x81   :  { %v55_v15 = vpop.permute.xlu1 %54  ;;  %v63_v16 = vpop.permute.xlu0 %62 }
  0x82   :  { %v73_v31 = vmul.f32 %v72_v25, %v55_v15  ;;  %v75_v38 = vmul.f32 %v72_v25, %v63_v16 }
  0x85   :  { %v59_v18 = vpop.permute.xlu1 %58 }
  0x86   :  { %v28_v19 = vpop.permute.xlu0 %27  ;;  %v74_v28 = vmul.f32 %v72_v25, %v59_v18 }
  0x87   :  { %v49_v29 = vmul.f32 %v48_v24, %v28_v19 }
  0x89   :  { %v77_v36 = vadd.f32 %v73_v31, %v49_v29 }
  0x8a   :  { %v33_v22 = vpop.permute.xlu0 %32  ;;  %v43_v23 = vpop.permute.xlu1 %42 }
  0x8b   :  { %v50_v26 = vmul.f32 %v48_v24, %v33_v22  ;;  %v52_v43 = vmul.f32 %v48_v24, %v43_v23 }
  0x8d   :  { %v78_v32 = vadd.f32 %v74_v28, %v50_v26 }
  0x8e   :  { %v38_v27 = vpop.permute.xlu0 %37 }
  0x8f   :  { %v67_v30 = vpop.permute.xlu1 %66  ;;  %v51_v34 = vmul.f32 %v48_v24, %v38_v27 }
  0x90   :  { %v76_v40 = vmul.f32 %v72_v25, %v67_v30 }
  0x91   :  { %v79_v41 = vadd.f32 %v75_v38, %v51_v34 }
  0x92   :  { %v93_v33 = vpop.permute.xlu0 %92  ;;  %v80_v45 = vadd.f32 %v76_v40, %v52_v43 }
  0x93   :  { %v106_v35 = vadd.f32 %v93_v33, %v78_v32 }
  0x94   :  { %v88_v37 = vpop.permute.xlu1 %87 }
  0x95   :  { %418 = vtanh.f32 %v106_v35  ;;  %v105_v39 = vadd.f32 %v88_v37, %v77_v36 }
  0x97   :  { %420 = vtanh.f32 %v105_v39 }
  0x98   :  { %v98_v42 = vpop.permute.xlu1 %97 }
  0x99   :  { %v107_v44 = vadd.f32 %v98_v42, %v79_v41 }
  0x9b   :  { %422 = vtanh.f32 %v107_v44 }
  0x9c   :  { %v103_v46 = vpop.permute.xlu1 %102 }
  0x9d   :  { %v108_v47 = vadd.f32 %v103_v46, %v80_v45 }
  0x9f   :  { %v419_v48 = vpop.eup %418  ;;  %424 = vtanh.f32 %v108_v47 }
  0xa1   :  { %v421_v49 = vpop.eup %420 }
  0xa2   :  { %v388_v50 = vpack.c.bf16 %v419_v48, %v421_v49 }
  0xa4   :  { %389 = vmatpush3.bf16.msra.mxu0 %v388_v50  ;;  %402 = vmatpush3.bf16.msra.mxu1 %v388_v50 }
  0xa5   :  { %v423_v51 = vpop.eup %422  ;;  %390 = vmatprep.subr.bf16.mxu0 %v438_v11  ;;  %400 = vmatprep.subr.bf16.mxu1 %v438_v11 }
  0xa9   :  { %v425_v52 = vpop.eup %424 }
  0xaa   :  { %v391_v53 = vpack.c.bf16 %v425_v52, %v423_v51 }
  0xac   :  { %392 = vmatpush3.bf16.msra.mxu0 %v391_v53  ;;  %403 = vmatpush3.bf16.msra.mxu1 %v391_v53 }
  0xad   :  { %359 = vmatprep.subr.mxu0 %v441_v13  ;;  %401 = vmatprep.subr.mxu1 %v441_v13 }
  0xb0   :  { %360 = vmatpush3.msk.msra.mxu0 %vm146_vm1, %v129_v54  ;;  %404 = vmatpush3.msk.msra.mxu1 %vm146_vm1, %v129_v54 }
  0xb1   :  { %362 = vmatmul.mubr.msk.f32.vlgmr.msra.gmra.mrb[0].mxu0 %vm130_vm2, %v120_v55  ;;  %368 = vmatmul.mubr.msk.f32.vlgmr.msra.gmra.mrb[0].mxu1 %vm130_vm2, %v122_v56 }
  0xb2   :  { %364 = vmatprep.mubr.msk.f32.mxu0 %vm440_vm0, %v441_v13  ;;  %370 = vmatprep.mubr.msk.f32.mxu1 %vm440_vm0, %v441_v13 }
  0xb3   :  { %393 = vmatprep.subr.bf16.mxu0 %v438_v11 }
  0xb5   :  { %365 = vmatmul.mubr.msk.f32.gmra.mrb[2].mxu0 %vm130_vm2, %v121_v57  ;;  %371 = vmatmul.mubr.msk.f32.gmra.mrb[2].mxu1 %vm130_vm2, %v123_v58 }
  0xb6   :  { %373 = vmatprep.mubr.msk.f32.mxu1 %vm440_vm0, %v441_v13  ;;  %384 = vmatprep.mubr.msk.f32.mxu0 %vm440_vm0, %v441_v13 }
  0xb9   :  { %374 = vmatmul.mubr.msk.f32.gmra.mrb[4].mxu1 %vm130_vm2, %v124_v59 }
 0x184   :  { %v216_v60 = vpop.f32.mrb[0].mxu0  ;;  %v226_v61 = vpop.f32.mrb[0].mxu1 }
 0x185   :  { %v363_v62 = vpop.f32.mrb[1].mxu0  ;;  %v369_v63 = vpop.f32.mrb[1].mxu1  ;;  %426 = vtanh.f32 %v216_v60 }
 0x186   :  { %428 = vtanh.f32 %v226_v61 }
 0x188   :  { %v221_v0 = vpop.f32.mrb[2].mxu0  ;;  %v231_v1 = vpop.f32.mrb[2].mxu1 }
 0x189   :  { %430 = vtanh.f32 %v221_v0  ;;  %v366_v2 = vpop.f32.mrb[3].mxu0  ;;  %v372_v3 = vpop.f32.mrb[3].mxu1 }
 0x18a   :  { %432 = vtanh.f32 %v231_v1 }
 0x18c   :  { %v236_v12 = vpop.f32.mrb[4].mxu1 }
 0x18d   :  { %v375_v13 = vpop.f32.mrb[5].mxu1 }
 0x18f   :  { %v427_v4 = vpop.eup %426 }
 0x190   :  { %v429_v5 = vpop.eup %428 }
 0x193   :  { %v431_v6 = vpop.eup %430 }
 0x194   :  { %v433_v7 = vpop.eup %432  ;;  %v394_v8 = vpack.c.bf16 %v431_v6, %v427_v4 }
 0x195   :  { %v397_v9 = vpack.c.bf16 %v433_v7, %v429_v5 }
 0x196   :  { %395 = vmatpush3.bf16.msra.mxu0 %v394_v8 }
 0x197   :  { %396 = vmatprep.subr.bf16.mxu0 %v438_v11 }
 0x19a   :  { %398 = vmatpush3.bf16.msra.mxu0 %v397_v9 }
 0x19d   :  { %385 = vmatmul.mubr.msk.f32.vlgmr.msra.gmra.mrb[4].mxu0 %vm245_vm3, %v244_v10 }
 0x270   :  { %v315_v14 = vpop.f32.mrb[4].mxu0 }
 0x271   :  { %v319_v15 = vadd.f32 %v315_v14, %v236_v12  ;;  %v386_v16 = vpop.f32.mrb[5].mxu0 }
 0x273   :  { %v320_v17 = vmul.f32 0.5, %v319_v15 }
 0x275   :  { %434 = vtanh.f32 %v320_v17 }
 0x27f   :  { %v435_v18 = vpop.eup %434 }
 0x280   :  { %v322_v19 = vadd.f32 1.0, %v435_v18 }
 0x282   :  { %v323_v20 = vmul.f32 0.5, %v322_v19 }
 0x284   :  { %324 = vst [vmem:[%s550_s5] sm:$0x1] %v323_v20 }

</bundles_post_ra>
